<compile_context>
chip_gen: v5e
topology: v5e:2x2
jax: 0.10.0
libtpu: 0.0.40
codegen_flags: <defaults>
</compile_context>

<pallas_src>
import functools

import jax
import jax.numpy as jnp
import numpy as np
from jax.experimental import pallas as pl
from jax.experimental.pallas import tpu as pltpu

LEAKY_SLOPE = 0.01
BN_EPS = 1e-5
NEG_BIG = -3.0e38          # stands in for -inf (MaxPool padding / softmax mask), safe in f32


def _leaky_relu(x):
    return jnp.where(x >= 0, x, LEAKY_SLOPE * x)


def _pad8(n):
    return ((n + 7) // 8) * 8


# ---------------------------------------------------------------------------
# Fused kernel: all frequency branches + Linear head, one invocation, no scratch.
# Ref order: x_0..x_{n-1}, pslab_0..pslab_{n-1}, head_slab, out.
# ---------------------------------------------------------------------------
def _fused_kernel(*refs, B, seq_lens, feat_dims, chans, hidden):
    nfreq = len(seq_lens)
    x_refs = refs[:nfreq]
    p_refs = refs[nfreq:2 * nfreq]
    ph_ref = refs[2 * nfreq]
    out_ref = refs[2 * nfreq + 1]
    H = hidden
    O = out_ref.shape[-1]

    hlin = None
    emb_off = 0
    for f in range(nfreq):
        L, F, C = seq_lens[f], feat_dims[f], chans[f]
        N = B * L
        pF, pC = _pad8(F), _pad8(C)
        o_attn = 3 * pF
        o_vec = o_attn + pC
        x_ref, p_ref = x_refs[f], p_refs[f]

        # Row-index masks (hoisted).  No vector div/mod: parity via bit-and (L is even, so global
        # parity == within-batch parity), batch boundaries via an unrolled compare over tiny B.
        ridx = jax.lax.broadcasted_iota(jnp.int32, (N, 1), 0)
        is_start = ridx == 0
        is_end = ridx == (L - 1)
        for b in range(1, B):
            is_start = jnp.logical_or(is_start, ridx == b * L)
            is_end = jnp.logical_or(is_end, ridx == b * L + L - 1)
        is_even = jnp.bitwise_and(ridx, 1) == 0

        # ---- Conv1d(kernel=3, padding=1): three accumulated matmuls on rolled copies ----
        x = x_ref[...]                                               # (N, F), batch in sublanes
        x_prev = jnp.where(is_start, 0.0, pltpu.roll(x, 1, 0))       # x[l-1]; 0 at batch starts
        x_next = jnp.where(is_end, 0.0, pltpu.roll(x, N - 1, 0))     # x[l+1]; 0 at batch ends
        wk0 = p_ref[0:F, 0:C]
        wk1 = p_ref[pF:pF + F, 0:C]
        wk2 = p_ref[2 * pF:2 * pF + F, 0:C]
        y = (jnp.dot(x_prev, wk0, preferred_element_type=jnp.float32)
             + jnp.dot(x, wk1, preferred_element_type=jnp.float32)
             + jnp.dot(x_next, wk2, preferred_element_type=jnp.float32)
             + p_ref[o_vec + 0:o_vec + 1, 0:C])                      # + conv bias

        # ---- BatchNorm1d (eval, running stats folded) + LeakyReLU ----
        y = _leaky_relu(y * p_ref[o_vec + 1:o_vec + 2, 0:C]
                        + p_ref[o_vec + 2:o_vec + 3, 0:C])           # (N, C)

        # ---- MaxPool1d(k=2, s=2, pad=1), in place (no scratch, no strided gather) ----
        # pooled[p] lives at row 2p (p < L/2) as max(y[2p-1], y[2p]), and at row L-1 as y[L-1];
        # `valid` marks exactly those L/2+1 rows per batch, everything else is masked downstream.
        y_prev = pltpu.roll(y, 1, 0)
        keep_prev = jnp.logical_and(is_even, jnp.logical_not(is_start))
        pooled = jnp.maximum(y, jnp.where(keep_prev, y_prev, NEG_BIG))
        valid = jnp.logical_or(is_even, is_end)                      # (N, 1)

        # ---- Attention: softmax_u(tanh(W h + b)) over the valid pooled rows, per batch ----
        h = jnp.tanh(jnp.dot(pooled, p_ref[o_attn:o_attn + C, 0:2 * C],
                             preferred_element_type=jnp.float32)
                     + p_ref[o_vec + 3:o_vec + 4, 0:2 * C])          # (N, 2C)
        s = jnp.sum(h * p_ref[o_vec + 4:o_vec + 5, 0:2 * C],
                    axis=-1, keepdims=True)                          # (N, 1) logits (VPU + XLU)
        # One global max shift (softmax is invariant to any per-batch constant; tanh-bounded
        # logits keep this numerically safe), invalid rows are zeroed after the exp.
        gmax = jnp.max(jnp.where(valid, s, NEG_BIG), axis=0, keepdims=True)   # (1, 1)
        e = jnp.where(valid, jnp.exp(s - gmax), 0.0)                 # (N, 1) unnormalized weights

        # Per-batch weighted sum + normalizer via block-diagonal selector matmuls
        # (no per-batch python loop, no sublane concat).
        bi = jax.lax.broadcasted_iota(jnp.int32, (B, N), 0)
        ci = jax.lax.broadcasted_iota(jnp.int32, (B, N), 1)
        lo = bi * L
        sel = jnp.logical_and(ci >= lo, ci < lo + L).astype(jnp.float32)      # (B, N)
        num = jnp.dot(sel, e * pooled, preferred_element_type=jnp.float32)    # (B, C)
        den = jnp.dot(sel, e, preferred_element_type=jnp.float32)             # (B, 1)
        emb_f = num / den                                                     # (B, C)

        # ---- Head first Linear, accumulated per branch (no lane concat of embeddings) ----
        part = jnp.dot(emb_f, ph_ref[emb_off:emb_off + C, 0:H],
                       preferred_element_type=jnp.float32)                    # (B, H)
        hlin = part if hlin is None else hlin + part
        emb_off += C

    # ---- Linear head: +bias -> LeakyReLU -> BatchNorm (eval, folded) -> final Linear ----
    D = emb_off
    o_w2 = _pad8(D)
    o_vec = o_w2 + _pad8(H)
    hl = _leaky_relu(hlin + ph_ref[o_vec + 0:o_vec + 1, 0:H])
    hl = hl * ph_ref[o_vec + 1:o_vec + 2, 0:H] + ph_ref[o_vec + 2:o_vec + 3, 0:H]
    out_ref[...] = (jnp.dot(hl, ph_ref[o_w2:o_w2 + H, 0:O],
                            preferred_element_type=jnp.float32)
                    + ph_ref[o_vec + 3:o_vec + 4, 0:O])


# ---------------------------------------------------------------------------
# Wrapper: one pallas_call, no grid, whole (tiny) operands mapped into VMEM.
# ---------------------------------------------------------------------------
def autoencoder_forward(data, packed_freq, packed_head, nodes_per_freq, hidden, out_nodes):
    active = [i for i in range(len(data)) if nodes_per_freq[i] != 0]
    B = data[active[0]].shape[0]

    seq_lens, feat_dims, chans, xs, ps = [], [], [], [], []
    for i in active:
        x = data[i]
        _, L, F = x.shape
        assert L % 2 == 0, "MaxPool pairing / parity trick assume an even sequence length"
        seq_lens.append(L)
        feat_dims.append(F)
        chans.append(int(nodes_per_freq[i]))
        xs.append(x.reshape(B * L, F))         # free reshape; conv padding handled in-kernel
        ps.append(packed_freq[i])

    kernel = functools.partial(
        _fused_kernel, B=B, seq_lens=tuple(seq_lens), feat_dims=tuple(feat_dims),
        chans=tuple(chans), hidden=hidden)

    out = pl.pallas_call(
        kernel,
        out_shape=jax.ShapeDtypeStruct((B, out_nodes), jnp.float32),
        # No grid / specs: single invocation, every operand is one whole-array VMEM block,
        # no software-pipeline prologue and no double-buffering of the packed slabs.
    )(*xs, *ps, packed_head)
    return out.squeeze(-1)


# ---------------------------------------------------------------------------
# Host-side packing of the per-branch / head parameters into a few slabs
# (one DMA per branch + one for the head) with 8-aligned static row offsets.
# ---------------------------------------------------------------------------
def pack_params(freq_params, head_params, nodes_per_freq, num_feats):
    packed_freq = []
    for i, p in enumerate(freq_params):
        if p is None or nodes_per_freq[i] == 0:
            packed_freq.append(None)
            continue
        F, C = num_feats[i], nodes_per_freq[i]
        pF, pC = _pad8(F), _pad8(C)
        o_attn, o_vec = 3 * pF, 3 * pF + pC
        slab = np.zeros((o_vec + 8, 2 * C), np.float32)
        w = np.asarray(p["conv_w"])                        # (3, F, C)
        for k in range(3):
            slab[k * pF:k * pF + F, :C] = w[k]
        slab[o_attn:o_attn + C, :2 * C] = np.asarray(p["attn_w"])
        slab[o_vec + 0, :C] = np.asarray(p["conv_b"])
        slab[o_vec + 1, :C] = np.asarray(p["bn_scale"])
        slab[o_vec + 2, :C] = np.asarray(p["bn_shift"])
        slab[o_vec + 3, :2 * C] = np.asarray(p["attn_b"])
        slab[o_vec + 4, :2 * C] = np.asarray(p["attn_u"])
        packed_freq.append(jnp.asarray(slab))

    D, H = head_params["w1"].shape
    O = head_params["w2"].shape[1]
    o_w2, o_vec = _pad8(D), _pad8(D) + _pad8(H)
    hslab = np.zeros((o_vec + 8, max(H, O)), np.float32)
    hslab[0:D, :H] = np.asarray(head_params["w1"])
    hslab[o_w2:o_w2 + H, :O] = np.asarray(head_params["w2"])
    hslab[o_vec + 0, :H] = np.asarray(head_params["b1"])
    hslab[o_vec + 1, :H] = np.asarray(head_params["bn_scale"])
    hslab[o_vec + 2, :H] = np.asarray(head_params["bn_shift"])
    hslab[o_vec + 3, :O] = np.asarray(head_params["b2"])
    return packed_freq, jnp.asarray(hslab)


# ---------------------------------------------------------------------------
# Deterministic parameter init (shapes follow the PyTorch module __init__).
# ---------------------------------------------------------------------------
def init_params(key, nodes_per_freq, num_feats, hidden, out_nodes):
    keys = jax.random.split(key, len(nodes_per_freq) + 1)
    freq_params = []
    for i, (C, F) in enumerate(zip(nodes_per_freq, num_feats)):
        if C == 0:
            freq_params.append(None)
            continue
        ks = jax.random.split(keys[i], 4)
        freq_params.append({
            "conv_w": jax.random.normal(ks[0], (3, F, C), jnp.float32) * 0.3,   # (K, F, C)
            "conv_b": jax.random.normal(ks[1], (C,), jnp.float32) * 0.05,
            "bn_scale": jnp.full((C,), 1.0 / np.sqrt(1.0 + BN_EPS), jnp.float32),
            "bn_shift": jnp.zeros((C,), jnp.float32),
            "attn_w": jax.random.normal(ks[2], (C, 2 * C), jnp.float32) * 0.3,  # W^T
            "attn_b": jnp.zeros((2 * C,), jnp.float32),                         # W bias = 0
            "attn_u": jax.random.normal(ks[3], (2 * C,), jnp.float32) * 0.3,
        })
    D = sum(nodes_per_freq)
    kh = jax.random.split(keys[-1], 4)
    head = {
        "w1": jax.random.normal(kh[0], (D, hidden), jnp.float32) * 0.2,
        "b1": jax.random.normal(kh[1], (hidden,), jnp.float32) * 0.05,
        "bn_scale": jnp.full((hidden,), 1.0 / np.sqrt(1.0 + BN_EPS), jnp.float32),
        "bn_shift": jnp.zeros((hidden,), jnp.float32),
        "w2": jax.random.normal(kh[2], (hidden, out_nodes), jnp.float32) * 0.2,
        "b2": jax.random.normal(kh[3], (out_nodes,), jnp.float32) * 0.05,
    }
    return freq_params, head


# ---------------------------------------------------------------------------
# Pure-JAX reference (same math, no Pallas) for a correctness check.
# ---------------------------------------------------------------------------
def ref_forward(data, freq_params, head_params, nodes_per_freq):
    outs = []
    for i in range(len(data)):
        if nodes_per_freq[i] == 0:
            continue
        x, p = data[i], freq_params[i]
        B, L, F = x.shape
        xp = jnp.pad(x, ((0, 0), (1, 1), (0, 0)))
        y = p["conv_b"]
        for k in range(3):
            y = y + jnp.einsum("blf,fc->blc", xp[:, k:k + L, :], p["conv_w"][k])
        y = _leaky_relu(y * p["bn_scale"] + p["bn_shift"])
        pooled = jnp.concatenate(
            [y[:, 0:1], jnp.maximum(y[:, 1:L - 1:2], y[:, 2:L:2]), y[:, L - 1:L]], axis=1)
        h = jnp.tanh(jnp.einsum("blc,ch->blh", pooled, p["attn_w"]) + p["attn_b"])
        s = jnp.sum(h * p["attn_u"], axis=-1, keepdims=True)
        aw = jax.nn.softmax(s, axis=-2)
        outs.append(jnp.sum(pooled * aw, axis=-2))
    cont = jnp.concatenate(outs, axis=-1)
    hh = _leaky_relu(cont @ head_params["w1"] + head_params["b1"])
    hh = hh * head_params["bn_scale"] + head_params["bn_shift"]
    return (hh @ head_params["w2"] + head_params["b2"]).squeeze(-1)


if __name__ == "__main__":
    B = 2
    nodes_per_freq = [8, 8]     # conv channels per frequency model
    num_feats = [4, 6]          # NumFeats[i]
    seq_lens_cfg = [16, 12]     # per-frequency sequence lengths
    hidden = 32                 # nodes_before_last_layer
    out_nodes = 1               # config.Out_Nodes

    key = jax.random.PRNGKey(0)
    k_data, k_param = jax.random.split(key)
    data_keys = jax.random.split(k_data, len(seq_lens_cfg))
    data = [jax.random.normal(data_keys[i], (B, seq_lens_cfg[i], num_feats[i]), jnp.float32)
            for i in range(len(seq_lens_cfg))]

    freq_params, head_params = init_params(k_param, nodes_per_freq, num_feats,
                                           hidden, out_nodes)
    packed_freq, packed_head = pack_params(freq_params, head_params,
                                           nodes_per_freq, num_feats)

    out = autoencoder_forward(data, packed_freq, packed_head, nodes_per_freq,
                              hidden, out_nodes)
    out = jax.block_until_ready(out)

    ref = ref_forward(data, freq_params, head_params, nodes_per_freq)
    np.testing.assert_allclose(np.asarray(out), np.asarray(ref), rtol=1e-3, atol=1e-3)
    print("KERNEL_OK")
</pallas_src>

<mosaic_0001>
module attributes {stable_mosaic.version = 11 : i64} {
  func.func @_fused_kernel(%arg0: memref<32x4xf32, #tpu.memory_space<vmem>>, %arg1: memref<24x6xf32, #tpu.memory_space<vmem>>, %arg2: memref<40x16xf32, #tpu.memory_space<vmem>>, %arg3: memref<40x16xf32, #tpu.memory_space<vmem>>, %arg4: memref<56x32xf32, #tpu.memory_space<vmem>>, %arg5: memref<2x1xf32, #tpu.memory_space<vmem>>) attributes {dimension_semantics = [], scalar_prefetch = 0 : i64, scratch_operands = 0 : i64, tpu.core_type = #tpu.core_type<tc>} {
    %0 = tpu.iota {dimensions = array<i32: 0>} : vector<32x1xi32>
    %c0_i32 = arith.constant 0 : i32
    %1 = vector.broadcast %c0_i32 : i32 to vector<32x1xi32>
    %2 = arith.cmpi eq, %0, %1 : vector<32x1xi32>
    %c15_i32 = arith.constant 15 : i32
    %3 = vector.broadcast %c15_i32 : i32 to vector<32x1xi32>
    %4 = arith.cmpi eq, %0, %3 : vector<32x1xi32>
    %c16_i32 = arith.constant 16 : i32
    %5 = vector.broadcast %c16_i32 : i32 to vector<32x1xi32>
    %6 = arith.cmpi eq, %0, %5 : vector<32x1xi32>
    %7 = arith.ori %2, %6 : vector<32x1xi1>
    %c31_i32 = arith.constant 31 : i32
    %8 = vector.broadcast %c31_i32 : i32 to vector<32x1xi32>
    %9 = arith.cmpi eq, %0, %8 : vector<32x1xi32>
    %10 = arith.ori %4, %9 : vector<32x1xi1>
    %c1_i32 = arith.constant 1 : i32
    %11 = vector.broadcast %c1_i32 : i32 to vector<32x1xi32>
    %12 = arith.andi %0, %11 : vector<32x1xi32>
    %c0_i32_0 = arith.constant 0 : i32
    %13 = vector.broadcast %c0_i32_0 : i32 to vector<32x1xi32>
    %14 = arith.cmpi eq, %12, %13 : vector<32x1xi32>
    %c0 = arith.constant 0 : index
    %c0_1 = arith.constant 0 : index
    %15 = vector.load %arg0[%c0, %c0_1] : memref<32x4xf32, #tpu.memory_space<vmem>>, vector<32x4xf32>
    %c1_i32_2 = arith.constant 1 : i32
    %16 = tpu.dynamic_rotate %15 by %c1_i32_2 dim 0 : vector<32x4xf32>, i32 -> vector<32x4xf32>
    %cst = arith.constant 0.000000e+00 : f32
    %17 = vector.shape_cast %7 : vector<32x1xi1> to vector<32x1xi1>
    %18 = vector.broadcast %17 : vector<32x1xi1> to vector<32x4xi1>
    %19 = vector.broadcast %cst : f32 to vector<32x4xf32>
    %20 = arith.select %18, %19, %16 : vector<32x4xi1>, vector<32x4xf32>
    %c31_i32_3 = arith.constant 31 : i32
    %21 = tpu.dynamic_rotate %15 by %c31_i32_3 dim 0 : vector<32x4xf32>, i32 -> vector<32x4xf32>
    %cst_4 = arith.constant 0.000000e+00 : f32
    %22 = vector.shape_cast %10 : vector<32x1xi1> to vector<32x1xi1>
    %23 = vector.broadcast %22 : vector<32x1xi1> to vector<32x4xi1>
    %24 = vector.broadcast %cst_4 : f32 to vector<32x4xf32>
    %25 = arith.select %23, %24, %21 : vector<32x4xi1>, vector<32x4xf32>
    %c0_5 = arith.constant 0 : index
    %c0_6 = arith.constant 0 : index
    %26 = vector.load %arg2[%c0_5, %c0_6] : memref<40x16xf32, #tpu.memory_space<vmem>>, vector<4x8xf32>
    %c8 = arith.constant 8 : index
    %c0_7 = arith.constant 0 : index
    %27 = vector.load %arg2[%c8, %c0_7] : memref<40x16xf32, #tpu.memory_space<vmem>>, vector<4x8xf32>
    %c16 = arith.constant 16 : index
    %c0_8 = arith.constant 0 : index
    %28 = vector.load %arg2[%c16, %c0_8] : memref<40x16xf32, #tpu.memory_space<vmem>>, vector<4x8xf32>
    %cst_9 = arith.constant dense<0.000000e+00> : vector<32x8xf32>
    %29 = tpu.matmul %20, %26, %cst_9 {dimension_numbers = #tpu.dot_dimension_numbers<[1], [0], [0], [1], [0, 0, 1, 1], [], []>} : vector<32x4xf32>, vector<4x8xf32>, vector<32x8xf32> -> vector<32x8xf32>
    %cst_10 = arith.constant dense<0.000000e+00> : vector<32x8xf32>
    %30 = tpu.matmul %15, %27, %cst_10 {dimension_numbers = #tpu.dot_dimension_numbers<[1], [0], [0], [1], [0, 0, 1, 1], [], []>} : vector<32x4xf32>, vector<4x8xf32>, vector<32x8xf32> -> vector<32x8xf32>
    %31 = arith.addf %29, %30 : vector<32x8xf32>
    %cst_11 = arith.constant dense<0.000000e+00> : vector<32x8xf32>
    %32 = tpu.matmul %25, %28, %cst_11 {dimension_numbers = #tpu.dot_dimension_numbers<[1], [0], [0], [1], [0, 0, 1, 1], [], []>} : vector<32x4xf32>, vector<4x8xf32>, vector<32x8xf32> -> vector<32x8xf32>
    %33 = arith.addf %31, %32 : vector<32x8xf32>
    %c32 = arith.constant 32 : index
    %c0_12 = arith.constant 0 : index
    %34 = vector.load %arg2[%c32, %c0_12] : memref<40x16xf32, #tpu.memory_space<vmem>>, vector<1x8xf32>
    %35 = vector.broadcast %34 : vector<1x8xf32> to vector<32x8xf32>
    %36 = arith.addf %33, %35 : vector<32x8xf32>
    %c33 = arith.constant 33 : index
    %c0_13 = arith.constant 0 : index
    %37 = vector.load %arg2[%c33, %c0_13] : memref<40x16xf32, #tpu.memory_space<vmem>>, vector<1x8xf32>
    %38 = vector.broadcast %37 : vector<1x8xf32> to vector<32x8xf32>
    %39 = arith.mulf %36, %38 : vector<32x8xf32>
    %c34 = arith.constant 34 : index
    %c0_14 = arith.constant 0 : index
    %40 = vector.load %arg2[%c34, %c0_14] : memref<40x16xf32, #tpu.memory_space<vmem>>, vector<1x8xf32>
    %41 = vector.broadcast %40 : vector<1x8xf32> to vector<32x8xf32>
    %42 = arith.addf %39, %41 : vector<32x8xf32>
    %cst_15 = arith.constant 0.000000e+00 : f32
    %43 = vector.broadcast %cst_15 : f32 to vector<32x8xf32>
    %44 = arith.cmpf oge, %42, %43 : vector<32x8xf32>
    %cst_16 = arith.constant 0.00999999977 : f32
    %45 = vector.broadcast %cst_16 : f32 to vector<32x8xf32>
    %46 = arith.mulf %45, %42 : vector<32x8xf32>
    %47 = arith.select %44, %42, %46 : vector<32x8xi1>, vector<32x8xf32>
    %c1_i32_17 = arith.constant 1 : i32
    %48 = tpu.dynamic_rotate %47 by %c1_i32_17 dim 0 : vector<32x8xf32>, i32 -> vector<32x8xf32>
    %cst_18 = arith.constant dense<true> : vector<32x1xi1>
    %49 = arith.xori %7, %cst_18 : vector<32x1xi1>
    %50 = arith.andi %14, %49 : vector<32x1xi1>
    %cst_19 = arith.constant -3.000000e+38 : f32
    %51 = vector.shape_cast %50 : vector<32x1xi1> to vector<32x1xi1>
    %52 = vector.broadcast %51 : vector<32x1xi1> to vector<32x8xi1>
    %53 = vector.broadcast %cst_19 : f32 to vector<32x8xf32>
    %54 = arith.select %52, %48, %53 : vector<32x8xi1>, vector<32x8xf32>
    %55 = arith.maximumf %47, %54 : vector<32x8xf32>
    %56 = arith.ori %14, %10 : vector<32x1xi1>
    %c24 = arith.constant 24 : index
    %c0_20 = arith.constant 0 : index
    %57 = vector.load %arg2[%c24, %c0_20] : memref<40x16xf32, #tpu.memory_space<vmem>>, vector<8x16xf32>
    %cst_21 = arith.constant dense<0.000000e+00> : vector<32x16xf32>
    %58 = tpu.matmul %55, %57, %cst_21 {dimension_numbers = #tpu.dot_dimension_numbers<[1], [0], [0], [1], [0, 0, 1, 1], [], []>} : vector<32x8xf32>, vector<8x16xf32>, vector<32x16xf32> -> vector<32x16xf32>
    %c35 = arith.constant 35 : index
    %c0_22 = arith.constant 0 : index
    %59 = vector.load %arg2[%c35, %c0_22] : memref<40x16xf32, #tpu.memory_space<vmem>>, vector<1x16xf32>
    %60 = vector.broadcast %59 : vector<1x16xf32> to vector<32x16xf32>
    %61 = arith.addf %58, %60 : vector<32x16xf32>
    %62 = math.tanh %61 : vector<32x16xf32>
    %c36 = arith.constant 36 : index
    %c0_23 = arith.constant 0 : index
    %63 = vector.load %arg2[%c36, %c0_23] : memref<40x16xf32, #tpu.memory_space<vmem>>, vector<1x16xf32>
    %64 = vector.broadcast %63 : vector<1x16xf32> to vector<32x16xf32>
    %65 = arith.mulf %62, %64 : vector<32x16xf32>
    %cst_24 = arith.constant dense<0.000000e+00> : vector<32xf32>
    %66 = vector.multi_reduction <add>, %65, %cst_24 [1] : vector<32x16xf32> to vector<32xf32>
    %67 = vector.shape_cast %66 : vector<32xf32> to vector<32x1xf32>
    %cst_25 = arith.constant -3.000000e+38 : f32
    %68 = vector.broadcast %cst_25 : f32 to vector<32x1xf32>
    %69 = arith.select %56, %67, %68 : vector<32x1xi1>, vector<32x1xf32>
    %cst_26 = arith.constant dense<0xFF800000> : vector<1xf32>
    %70 = vector.multi_reduction <maximumf>, %69, %cst_26 [0] : vector<32x1xf32> to vector<1xf32>
    %71 = vector.shape_cast %70 : vector<1xf32> to vector<1x1xf32>
    %72 = vector.broadcast %71 : vector<1x1xf32> to vector<32x1xf32>
    %73 = arith.subf %67, %72 : vector<32x1xf32>
    %74 = math.exp %73 : vector<32x1xf32>
    %cst_27 = arith.constant 0.000000e+00 : f32
    %75 = vector.broadcast %cst_27 : f32 to vector<32x1xf32>
    %76 = arith.select %56, %74, %75 : vector<32x1xi1>, vector<32x1xf32>
    %77 = tpu.iota {dimensions = array<i32: 0>} : vector<2x32xi32>
    %78 = tpu.iota {dimensions = array<i32: 1>} : vector<2x32xi32>
    %c16_i32_28 = arith.constant 16 : i32
    %79 = vector.broadcast %c16_i32_28 : i32 to vector<2x32xi32>
    %80 = arith.muli %77, %79 : vector<2x32xi32>
    %81 = arith.cmpi sge, %78, %80 : vector<2x32xi32>
    %c16_i32_29 = arith.constant 16 : i32
    %82 = vector.broadcast %c16_i32_29 : i32 to vector<2x32xi32>
    %83 = arith.addi %80, %82 : vector<2x32xi32>
    %84 = arith.cmpi slt, %78, %83 : vector<2x32xi32>
    %85 = arith.andi %81, %84 : vector<2x32xi1>
    %86 = arith.extui %85 : vector<2x32xi1> to vector<2x32xi32>
    %87 = arith.sitofp %86 : vector<2x32xi32> to vector<2x32xf32>
    %88 = vector.broadcast %76 : vector<32x1xf32> to vector<32x8xf32>
    %89 = arith.mulf %88, %55 : vector<32x8xf32>
    %cst_30 = arith.constant dense<0.000000e+00> : vector<2x8xf32>
    %90 = tpu.matmul %87, %89, %cst_30 {dimension_numbers = #tpu.dot_dimension_numbers<[1], [0], [0], [1], [0, 0, 1, 1], [], []>} : vector<2x32xf32>, vector<32x8xf32>, vector<2x8xf32> -> vector<2x8xf32>
    %cst_31 = arith.constant dense<0.000000e+00> : vector<2x1xf32>
    %91 = tpu.matmul %87, %76, %cst_31 {dimension_numbers = #tpu.dot_dimension_numbers<[1], [0], [0], [1], [0, 0, 1, 1], [], []>} : vector<2x32xf32>, vector<32x1xf32>, vector<2x1xf32> -> vector<2x1xf32>
    %92 = vector.broadcast %91 : vector<2x1xf32> to vector<2x8xf32>
    %93 = arith.divf %90, %92 : vector<2x8xf32>
    %c0_32 = arith.constant 0 : index
    %c0_33 = arith.constant 0 : index
    %94 = vector.load %arg4[%c0_32, %c0_33] : memref<56x32xf32, #tpu.memory_space<vmem>>, vector<8x32xf32>
    %cst_34 = arith.constant dense<0.000000e+00> : vector<2x32xf32>
    %95 = tpu.matmul %93, %94, %cst_34 {dimension_numbers = #tpu.dot_dimension_numbers<[1], [0], [0], [1], [0, 0, 1, 1], [], []>} : vector<2x8xf32>, vector<8x32xf32>, vector<2x32xf32> -> vector<2x32xf32>
    %96 = tpu.iota {dimensions = array<i32: 0>} : vector<24x1xi32>
    %c0_i32_35 = arith.constant 0 : i32
    %97 = vector.broadcast %c0_i32_35 : i32 to vector<24x1xi32>
    %98 = arith.cmpi eq, %96, %97 : vector<24x1xi32>
    %c11_i32 = arith.constant 11 : i32
    %99 = vector.broadcast %c11_i32 : i32 to vector<24x1xi32>
    %100 = arith.cmpi eq, %96, %99 : vector<24x1xi32>
    %c12_i32 = arith.constant 12 : i32
    %101 = vector.broadcast %c12_i32 : i32 to vector<24x1xi32>
    %102 = arith.cmpi eq, %96, %101 : vector<24x1xi32>
    %103 = arith.ori %98, %102 : vector<24x1xi1>
    %c23_i32 = arith.constant 23 : i32
    %104 = vector.broadcast %c23_i32 : i32 to vector<24x1xi32>
    %105 = arith.cmpi eq, %96, %104 : vector<24x1xi32>
    %106 = arith.ori %100, %105 : vector<24x1xi1>
    %c1_i32_36 = arith.constant 1 : i32
    %107 = vector.broadcast %c1_i32_36 : i32 to vector<24x1xi32>
    %108 = arith.andi %96, %107 : vector<24x1xi32>
    %c0_i32_37 = arith.constant 0 : i32
    %109 = vector.broadcast %c0_i32_37 : i32 to vector<24x1xi32>
    %110 = arith.cmpi eq, %108, %109 : vector<24x1xi32>
    %c0_38 = arith.constant 0 : index
    %c0_39 = arith.constant 0 : index
    %111 = vector.load %arg1[%c0_38, %c0_39] : memref<24x6xf32, #tpu.memory_space<vmem>>, vector<24x6xf32>
    %c1_i32_40 = arith.constant 1 : i32
    %112 = tpu.dynamic_rotate %111 by %c1_i32_40 dim 0 : vector<24x6xf32>, i32 -> vector<24x6xf32>
    %cst_41 = arith.constant 0.000000e+00 : f32
    %113 = vector.shape_cast %103 : vector<24x1xi1> to vector<24x1xi1>
    %114 = vector.broadcast %113 : vector<24x1xi1> to vector<24x6xi1>
    %115 = vector.broadcast %cst_41 : f32 to vector<24x6xf32>
    %116 = arith.select %114, %115, %112 : vector<24x6xi1>, vector<24x6xf32>
    %c23_i32_42 = arith.constant 23 : i32
    %117 = tpu.dynamic_rotate %111 by %c23_i32_42 dim 0 : vector<24x6xf32>, i32 -> vector<24x6xf32>
    %cst_43 = arith.constant 0.000000e+00 : f32
    %118 = vector.shape_cast %106 : vector<24x1xi1> to vector<24x1xi1>
    %119 = vector.broadcast %118 : vector<24x1xi1> to vector<24x6xi1>
    %120 = vector.broadcast %cst_43 : f32 to vector<24x6xf32>
    %121 = arith.select %119, %120, %117 : vector<24x6xi1>, vector<24x6xf32>
    %c0_44 = arith.constant 0 : index
    %c0_45 = arith.constant 0 : index
    %122 = vector.load %arg3[%c0_44, %c0_45] : memref<40x16xf32, #tpu.memory_space<vmem>>, vector<6x8xf32>
    %c8_46 = arith.constant 8 : index
    %c0_47 = arith.constant 0 : index
    %123 = vector.load %arg3[%c8_46, %c0_47] : memref<40x16xf32, #tpu.memory_space<vmem>>, vector<6x8xf32>
    %c16_48 = arith.constant 16 : index
    %c0_49 = arith.constant 0 : index
    %124 = vector.load %arg3[%c16_48, %c0_49] : memref<40x16xf32, #tpu.memory_space<vmem>>, vector<6x8xf32>
    %cst_50 = arith.constant dense<0.000000e+00> : vector<24x8xf32>
    %125 = tpu.matmul %116, %122, %cst_50 {dimension_numbers = #tpu.dot_dimension_numbers<[1], [0], [0], [1], [0, 0, 1, 1], [], []>} : vector<24x6xf32>, vector<6x8xf32>, vector<24x8xf32> -> vector<24x8xf32>
    %cst_51 = arith.constant dense<0.000000e+00> : vector<24x8xf32>
    %126 = tpu.matmul %111, %123, %cst_51 {dimension_numbers = #tpu.dot_dimension_numbers<[1], [0], [0], [1], [0, 0, 1, 1], [], []>} : vector<24x6xf32>, vector<6x8xf32>, vector<24x8xf32> -> vector<24x8xf32>
    %127 = arith.addf %125, %126 : vector<24x8xf32>
    %cst_52 = arith.constant dense<0.000000e+00> : vector<24x8xf32>
    %128 = tpu.matmul %121, %124, %cst_52 {dimension_numbers = #tpu.dot_dimension_numbers<[1], [0], [0], [1], [0, 0, 1, 1], [], []>} : vector<24x6xf32>, vector<6x8xf32>, vector<24x8xf32> -> vector<24x8xf32>
    %129 = arith.addf %127, %128 : vector<24x8xf32>
    %c32_53 = arith.constant 32 : index
    %c0_54 = arith.constant 0 : index
    %130 = vector.load %arg3[%c32_53, %c0_54] : memref<40x16xf32, #tpu.memory_space<vmem>>, vector<1x8xf32>
    %131 = vector.broadcast %130 : vector<1x8xf32> to vector<24x8xf32>
    %132 = arith.addf %129, %131 : vector<24x8xf32>
    %c33_55 = arith.constant 33 : index
    %c0_56 = arith.constant 0 : index
    %133 = vector.load %arg3[%c33_55, %c0_56] : memref<40x16xf32, #tpu.memory_space<vmem>>, vector<1x8xf32>
    %134 = vector.broadcast %133 : vector<1x8xf32> to vector<24x8xf32>
    %135 = arith.mulf %132, %134 : vector<24x8xf32>
    %c34_57 = arith.constant 34 : index
    %c0_58 = arith.constant 0 : index
    %136 = vector.load %arg3[%c34_57, %c0_58] : memref<40x16xf32, #tpu.memory_space<vmem>>, vector<1x8xf32>
    %137 = vector.broadcast %136 : vector<1x8xf32> to vector<24x8xf32>
    %138 = arith.addf %135, %137 : vector<24x8xf32>
    %cst_59 = arith.constant 0.000000e+00 : f32
    %139 = vector.broadcast %cst_59 : f32 to vector<24x8xf32>
    %140 = arith.cmpf oge, %138, %139 : vector<24x8xf32>
    %cst_60 = arith.constant 0.00999999977 : f32
    %141 = vector.broadcast %cst_60 : f32 to vector<24x8xf32>
    %142 = arith.mulf %141, %138 : vector<24x8xf32>
    %143 = arith.select %140, %138, %142 : vector<24x8xi1>, vector<24x8xf32>
    %c1_i32_61 = arith.constant 1 : i32
    %144 = tpu.dynamic_rotate %143 by %c1_i32_61 dim 0 : vector<24x8xf32>, i32 -> vector<24x8xf32>
    %cst_62 = arith.constant dense<true> : vector<24x1xi1>
    %145 = arith.xori %103, %cst_62 : vector<24x1xi1>
    %146 = arith.andi %110, %145 : vector<24x1xi1>
    %cst_63 = arith.constant -3.000000e+38 : f32
    %147 = vector.shape_cast %146 : vector<24x1xi1> to vector<24x1xi1>
    %148 = vector.broadcast %147 : vector<24x1xi1> to vector<24x8xi1>
    %149 = vector.broadcast %cst_63 : f32 to vector<24x8xf32>
    %150 = arith.select %148, %144, %149 : vector<24x8xi1>, vector<24x8xf32>
    %151 = arith.maximumf %143, %150 : vector<24x8xf32>
    %152 = arith.ori %110, %106 : vector<24x1xi1>
    %c24_64 = arith.constant 24 : index
    %c0_65 = arith.constant 0 : index
    %153 = vector.load %arg3[%c24_64, %c0_65] : memref<40x16xf32, #tpu.memory_space<vmem>>, vector<8x16xf32>
    %cst_66 = arith.constant dense<0.000000e+00> : vector<24x16xf32>
    %154 = tpu.matmul %151, %153, %cst_66 {dimension_numbers = #tpu.dot_dimension_numbers<[1], [0], [0], [1], [0, 0, 1, 1], [], []>} : vector<24x8xf32>, vector<8x16xf32>, vector<24x16xf32> -> vector<24x16xf32>
    %c35_67 = arith.constant 35 : index
    %c0_68 = arith.constant 0 : index
    %155 = vector.load %arg3[%c35_67, %c0_68] : memref<40x16xf32, #tpu.memory_space<vmem>>, vector<1x16xf32>
    %156 = vector.broadcast %155 : vector<1x16xf32> to vector<24x16xf32>
    %157 = arith.addf %154, %156 : vector<24x16xf32>
    %158 = math.tanh %157 : vector<24x16xf32>
    %c36_69 = arith.constant 36 : index
    %c0_70 = arith.constant 0 : index
    %159 = vector.load %arg3[%c36_69, %c0_70] : memref<40x16xf32, #tpu.memory_space<vmem>>, vector<1x16xf32>
    %160 = vector.broadcast %159 : vector<1x16xf32> to vector<24x16xf32>
    %161 = arith.mulf %158, %160 : vector<24x16xf32>
    %cst_71 = arith.constant dense<0.000000e+00> : vector<24xf32>
    %162 = vector.multi_reduction <add>, %161, %cst_71 [1] : vector<24x16xf32> to vector<24xf32>
    %163 = vector.shape_cast %162 : vector<24xf32> to vector<24x1xf32>
    %cst_72 = arith.constant -3.000000e+38 : f32
    %164 = vector.broadcast %cst_72 : f32 to vector<24x1xf32>
    %165 = arith.select %152, %163, %164 : vector<24x1xi1>, vector<24x1xf32>
    %cst_73 = arith.constant dense<0xFF800000> : vector<1xf32>
    %166 = vector.multi_reduction <maximumf>, %165, %cst_73 [0] : vector<24x1xf32> to vector<1xf32>
    %167 = vector.shape_cast %166 : vector<1xf32> to vector<1x1xf32>
    %168 = vector.broadcast %167 : vector<1x1xf32> to vector<24x1xf32>
    %169 = arith.subf %163, %168 : vector<24x1xf32>
    %170 = math.exp %169 : vector<24x1xf32>
    %cst_74 = arith.constant 0.000000e+00 : f32
    %171 = vector.broadcast %cst_74 : f32 to vector<24x1xf32>
    %172 = arith.select %152, %170, %171 : vector<24x1xi1>, vector<24x1xf32>
    %173 = tpu.iota {dimensions = array<i32: 0>} : vector<2x24xi32>
    %174 = tpu.iota {dimensions = array<i32: 1>} : vector<2x24xi32>
    %c12_i32_75 = arith.constant 12 : i32
    %175 = vector.broadcast %c12_i32_75 : i32 to vector<2x24xi32>
    %176 = arith.muli %173, %175 : vector<2x24xi32>
    %177 = arith.cmpi sge, %174, %176 : vector<2x24xi32>
    %c12_i32_76 = arith.constant 12 : i32
    %178 = vector.broadcast %c12_i32_76 : i32 to vector<2x24xi32>
    %179 = arith.addi %176, %178 : vector<2x24xi32>
    %180 = arith.cmpi slt, %174, %179 : vector<2x24xi32>
    %181 = arith.andi %177, %180 : vector<2x24xi1>
    %182 = arith.extui %181 : vector<2x24xi1> to vector<2x24xi32>
    %183 = arith.sitofp %182 : vector<2x24xi32> to vector<2x24xf32>
    %184 = vector.broadcast %172 : vector<24x1xf32> to vector<24x8xf32>
    %185 = arith.mulf %184, %151 : vector<24x8xf32>
    %cst_77 = arith.constant dense<0.000000e+00> : vector<2x8xf32>
    %186 = tpu.matmul %183, %185, %cst_77 {dimension_numbers = #tpu.dot_dimension_numbers<[1], [0], [0], [1], [0, 0, 1, 1], [], []>} : vector<2x24xf32>, vector<24x8xf32>, vector<2x8xf32> -> vector<2x8xf32>
    %cst_78 = arith.constant dense<0.000000e+00> : vector<2x1xf32>
    %187 = tpu.matmul %183, %172, %cst_78 {dimension_numbers = #tpu.dot_dimension_numbers<[1], [0], [0], [1], [0, 0, 1, 1], [], []>} : vector<2x24xf32>, vector<24x1xf32>, vector<2x1xf32> -> vector<2x1xf32>
    %188 = vector.broadcast %187 : vector<2x1xf32> to vector<2x8xf32>
    %189 = arith.divf %186, %188 : vector<2x8xf32>
    %c8_79 = arith.constant 8 : index
    %c0_80 = arith.constant 0 : index
    %190 = vector.load %arg4[%c8_79, %c0_80] : memref<56x32xf32, #tpu.memory_space<vmem>>, vector<8x32xf32>
    %cst_81 = arith.constant dense<0.000000e+00> : vector<2x32xf32>
    %191 = tpu.matmul %189, %190, %cst_81 {dimension_numbers = #tpu.dot_dimension_numbers<[1], [0], [0], [1], [0, 0, 1, 1], [], []>} : vector<2x8xf32>, vector<8x32xf32>, vector<2x32xf32> -> vector<2x32xf32>
    %192 = arith.addf %95, %191 : vector<2x32xf32>
    %c48 = arith.constant 48 : index
    %c0_82 = arith.constant 0 : index
    %193 = vector.load %arg4[%c48, %c0_82] : memref<56x32xf32, #tpu.memory_space<vmem>>, vector<1x32xf32>
    %194 = vector.broadcast %193 : vector<1x32xf32> to vector<2x32xf32>
    %195 = arith.addf %192, %194 : vector<2x32xf32>
    %cst_83 = arith.constant 0.000000e+00 : f32
    %196 = vector.broadcast %cst_83 : f32 to vector<2x32xf32>
    %197 = arith.cmpf oge, %195, %196 : vector<2x32xf32>
    %cst_84 = arith.constant 0.00999999977 : f32
    %198 = vector.broadcast %cst_84 : f32 to vector<2x32xf32>
    %199 = arith.mulf %198, %195 : vector<2x32xf32>
    %200 = arith.select %197, %195, %199 : vector<2x32xi1>, vector<2x32xf32>
    %c49 = arith.constant 49 : index
    %c0_85 = arith.constant 0 : index
    %201 = vector.load %arg4[%c49, %c0_85] : memref<56x32xf32, #tpu.memory_space<vmem>>, vector<1x32xf32>
    %202 = vector.broadcast %201 : vector<1x32xf32> to vector<2x32xf32>
    %203 = arith.mulf %200, %202 : vector<2x32xf32>
    %c50 = arith.constant 50 : index
    %c0_86 = arith.constant 0 : index
    %204 = vector.load %arg4[%c50, %c0_86] : memref<56x32xf32, #tpu.memory_space<vmem>>, vector<1x32xf32>
    %205 = vector.broadcast %204 : vector<1x32xf32> to vector<2x32xf32>
    %206 = arith.addf %203, %205 : vector<2x32xf32>
    %c16_87 = arith.constant 16 : index
    %c0_88 = arith.constant 0 : index
    %207 = vector.load %arg4[%c16_87, %c0_88] : memref<56x32xf32, #tpu.memory_space<vmem>>, vector<32x1xf32>
    %cst_89 = arith.constant dense<0.000000e+00> : vector<2x1xf32>
    %208 = tpu.matmul %206, %207, %cst_89 {dimension_numbers = #tpu.dot_dimension_numbers<[1], [0], [0], [1], [0, 0, 1, 1], [], []>} : vector<2x32xf32>, vector<32x1xf32>, vector<2x1xf32> -> vector<2x1xf32>
    %c51 = arith.constant 51 : index
    %c0_90 = arith.constant 0 : index
    %209 = vector.load %arg4[%c51, %c0_90] : memref<56x32xf32, #tpu.memory_space<vmem>>, vector<1x1xf32>
    %210 = vector.broadcast %209 : vector<1x1xf32> to vector<2x1xf32>
    %211 = arith.addf %208, %210 : vector<2x1xf32>
    %c0_91 = arith.constant 0 : index
    %c0_92 = arith.constant 0 : index
    %212 = vector.load %arg5[%c0_91, %c0_92] : memref<2x1xf32, #tpu.memory_space<vmem>>, vector<2x1xf32>
    tpu.vector_store %arg5[%c0_91, %c0_92], %211 {strides = array<i32>} : memref<2x1xf32, #tpu.memory_space<vmem>>, vector<2x1xf32>,
    return
  }
}

</mosaic_0001>

<bundles_post_ra>
// kernel: tpu_custom_call.1
= control target key start
LH: loop header
LB: loop body
LE: loop exit
PB: predicated region body
PF: predicated region fallthrough
CT: control target
= control target key end

     0   :  { %vm119_vm0 = vcmask 1043456   ;;  %v20_v0 = vlaneseq  ;;  %vm106_vm1 = vcmask 31744   ;;  %vm1054_vm12 = vmmov 1   ;;  %s1504_s2 = inlined_call_operand.vmem [shape: f32[40,16], index: 2, kind: input, shape index: {}]   ;;  %s1505_s0 = inlined_call_operand.vmem [shape: f32[32,4], index: 0, kind: input, shape index: {}]   ;;  %s1506_s3 = inlined_call_operand.vmem [shape: f32[40,16], index: 3, kind: input, shape index: {}]   ;;  %s1507_s1 = inlined_call_operand.vmem [shape: f32[24,6], index: 1, kind: input, shape index: {}]   ;;  %s1508_s4 = inlined_call_operand.vmem [shape: f32[56,32], index: 4, kind: input, shape index: {}]   ;;  %s1509_s5 = inlined_call_operand.vmem [shape: f32[2,1], index: 5, kind: output, shape index: {}]  }
   0x1   :  { %v105_v1 = vld [vmem:[%s1504_s2 + $0x10] sm:$0xf]  ;;  %v57_v2 = vld [vmem:[%s1505_s0] sm:$0xff]  ;;  %v58_v3 = vld [vmem:[%s1505_s0 + $0x8] sm:$0xff]  ;;  %vm1511_vm15 = vcmask 64512  }
   0x2   :  { %962 = vmatpush.msk.msra.mxu2 %vm119_vm0, %v105_v1  ;;  %v1098_v4 = vshrl.u32 %v20_v0, 7  ;;  %v82_v5 = vrot.slane %v57_v2, 1  ;;  %v83_v6 = vrot.slane %v58_v3, 1  ;;  %v104_v7 = vld [vmem:[%s1504_s2 + $0x8] sm:$0xf]  ;;  %v60_v8 = vld [vmem:[%s1505_s0 + $0x18] sm:$0xff] }
   0x3   :  { %952 = vmatpush.msk.msra.mxu0 %vm119_vm0, %v104_v7  ;;  %v103_v9 = vld [vmem:[%s1504_s2] sm:$0xf]  ;;  %v61_v10 = vrot.slane %v57_v2, 7  ;;  %v64_v11 = vrot.slane %v60_v8, 7  ;;  %v59_v12 = vld [vmem:[%s1505_s0 + $0x10] sm:$0xff]  ;;  %v62_v19 = vrot.slane %v58_v3, 7 }
   0x4   :  { %vm86_vm2 = vcmp.lt.s32.totalorder %v1098_v4, 7  ;;  %957 = vmatpush.msk.msra.mxu1 %vm119_vm0, %v103_v9  ;;  %953 = vmatmul.msk.f32.vlgmr.msra.gmra.mxu0 %vm106_vm1, %v57_v2  ;;  %vm25_vm3 = vcmp.eq.s32.totalorder %v1098_v4, 0  ;;  %vm65_vm4 = vcmp.lt.s32.totalorder %v1098_v4, 1  ;;  %v1119_v13 = vadd.s32 8, %v1098_v4  ;;  %v310_v37 = vld [vmem:[%s1504_s2 + $0x18] sm:$0xff] }
   0x5   :  { %v89_v14 = vsel %vm86_vm2, %v82_v5, %v83_v6  ;;  %v69_v15 = vsel %vm65_vm4, %v64_v11, %v61_v10  ;;  %v84_v16 = vrot.slane %v59_v12, 1  ;;  %v68_v21 = vsel %vm65_vm4, %v61_v10, %v62_v19  ;;  %341 = vmatpush.msra.mxu3 %v310_v37  ;;  %v1008_v44 = vld [vmem:[%s1504_s2 + $0x20] ss:$0 sm:$0xff]  ;;  %v1009_v48 = vld [vmem:[%s1504_s2 + $0x21] ss:$0 sm:$0xff]  ;;  %vm1185_vm13 = vmxor %vm25_vm3, %vm1054_vm12 }
   0x6   :  { %963 = vmatmul.msk.f32.vlgmr.msra.gmra.mxu2 %vm106_vm1, %v89_v14  ;;  %v78_v17 = vsel %vm25_vm3, 0.0, %v69_v15  ;;  %vm30_vm5 = vcmp.eq.s32.totalorder %v1119_v13, 15  ;;  %v1138_v22 = vadd.s32 16, %v1098_v4  ;;  %v63_v23 = vrot.slane %v59_v12, 7  ;;  %v1010_v54 = vld [vmem:[%s1504_s2 + $0x22] ss:$0 sm:$0xff] }
   0x7   :  { %958 = vmatmul.msk.f32.vlgmr.msra.gmra.mxu1 %vm106_vm1, %v78_v17  ;;  %v88_v18 = vsel %vm86_vm2, %v83_v6, %v84_v16  ;;  %v85_v24 = vrot.slane %v60_v8, 1  ;;  %v1151_v28 = vadd.s32 24, %v1098_v4  ;;  %v49_v2 = vand.u32 1, %v1098_v4 }
   0x8   :  { %v100_v20 = vsel %vm30_vm5, 0.0, %v88_v18  ;;  %vm35_vm6 = vcmp.eq.s32.totalorder %v1138_v22, 16  ;;  %v67_v25 = vsel %vm65_vm4, %v62_v19, %v63_v23  ;;  %v66_v31 = vsel %vm65_vm4, %v63_v23, %v64_v11 }
   0x9   :  { %v87_v26 = vsel %vm86_vm2, %v84_v16, %v85_v24  ;;  %v80_v27 = vsel %vm35_vm6, 0.0, %v67_v25  ;;  %vm44_vm7 = vcmp.eq.s32.totalorder %v1151_v28, 31  ;;  %v90_v29 = vsel %vm86_vm2, %v85_v24, %v82_v5 }
   0xa   :  { %v102_v30 = vsel %vm44_vm7, 0.0, %v90_v29  ;;  %vm1178_vm11 = vcmp.eq.s32.totalorder %v49_v2, 0  ;;  %v50_v18 = vand.u32 1, %v1119_v13 }
   0xb   :  { %vm1512_vm14 = vmand %vm1178_vm11, %vm1185_vm13 }
   0xc   :  { %954 = vmatmul.msk.f32.gmra.mxu0 %vm106_vm1, %v58_v3 }
   0xe   :  { %964 = vmatmul.msk.f32.gmra.mxu2 %vm106_vm1, %v100_v20 }
   0xf   :  { %959 = vmatmul.msk.f32.gmra.mxu1 %vm106_vm1, %v68_v21 }
  0x14   :  { %955 = vmatmul.msk.f32.gmra.mxu0 %vm106_vm1, %v59_v12 }
  0x16   :  { %965 = vmatmul.msk.f32.gmra.mxu2 %vm106_vm1, %v87_v26 }
  0x17   :  { %960 = vmatmul.msk.f32.gmra.mxu1 %vm106_vm1, %v80_v27  ;;  %v51_v27 = vand.u32 1, %v1138_v22 }
  0x1c   :  { %956 = vmatmul.msk.f32.gmra.mxu0 %vm106_vm1, %v60_v8 }
  0x1e   :  { %966 = vmatmul.msk.f32.gmra.mxu2 %vm106_vm1, %v102_v30 }
  0x1f   :  { %961 = vmatmul.msk.f32.gmra.mxu1 %vm106_vm1, %v66_v31  ;;  %vm1203_vm1 = vcmp.eq.s32.totalorder %v50_v18, 0 }
  0x81   :  { %v140_v32 = vpop.f32.mrf.mxu0 }
  0x84   :  { %v184_v33 = vpop.f32.mrf.mxu1 }
  0x85   :  { %v185_v40 = vadd.f32 %v184_v33, %v140_v32 }
  0x89   :  { %v228_v34 = vpop.f32.mrf.mxu2  ;;  %v143_v35 = vpop.f32.mrf.mxu0 }
  0x8a   :  { %v240_v43 = vadd.f32 %v228_v34, %v185_v40 }
  0x8c   :  { %v187_v36 = vpop.f32.mrf.mxu1  ;;  %v246_v47 = vadd.f32 %v1008_v44, %v240_v43 }
  0x8d   :  { %v188_v41 = vadd.f32 %v187_v36, %v143_v35  ;;  %v52_v36 = vand.u32 1, %v1151_v28 }
  0x8e   :  { %v252_v53 = vmul.f32 %v1009_v48, %v246_v47 }
  0x90   :  { %v258_v59 = vadd.f32 %v1010_v54, %v252_v53 }
  0x91   :  { %v231_v38 = vpop.f32.mrf.mxu2  ;;  %v146_v39 = vpop.f32.mrf.mxu0 }
  0x92   :  { %v241_v45 = vadd.f32 %v231_v38, %v188_v41  ;;  %v266_v3 = vmul.f32 0.01, %v258_v59  ;;  %vm262_vm8 = vcmp.ge.f32.partialorder %v258_v59, 0.0 }
  0x94   :  { %v190_v42 = vpop.f32.mrf.mxu1  ;;  %v247_v50 = vadd.f32 %v1008_v44, %v241_v45  ;;  %v270_v10 = vsel %vm262_vm8, %v258_v59, %v266_v3  ;;  %vm1214_vm8 = vcmp.eq.s32.totalorder %v51_v27, 0  ;;  %v1012_v45 = vld [vmem:[%s1504_s2 + $0x24] ss:$0 sm:$0xff]  ;;  %v535_v3 = vld [vmem:[%s1506_s3 + $0x10] sm:$0x3f] }
  0x95   :  { %v191_v51 = vadd.f32 %v190_v42, %v146_v39  ;;  %v274_v16 = vrot.slane %v270_v10, 7  ;;  %v1011_v42 = vld [vmem:[%s1504_s2 + $0x23] ss:$0 sm:$0xff] }
  0x96   :  { %v253_v56 = vmul.f32 %v1009_v48, %v247_v50 }
  0x98   :  { %v259_v61 = vadd.f32 %v1010_v54, %v253_v56 }
  0x99   :  { %v234_v46 = vpop.f32.mrf.mxu2  ;;  %v149_v49 = vpop.f32.mrf.mxu0 }
  0x9a   :  { %v242_v57 = vadd.f32 %v234_v46, %v191_v51  ;;  %v267_v7 = vmul.f32 0.01, %v259_v61  ;;  %vm263_vm9 = vcmp.ge.f32.partialorder %v259_v61, 0.0 }
  0x9c   :  { %v193_v52 = vpop.f32.mrf.mxu1  ;;  %v248_v62 = vadd.f32 %v1008_v44, %v242_v57  ;;  %v271_v15 = vsel %vm263_vm9, %v259_v61, %v267_v7  ;;  %vm284_vm9 = vmxor %vm35_vm6, %vm1054_vm12  ;;  %vm1234_vm6 = vcmp.eq.s32.totalorder %v52_v36, 0 }
  0x9d   :  { %v194_v55 = vadd.f32 %v193_v52, %v149_v49  ;;  %v275_v20 = vrot.slane %v271_v15, 7 }
  0x9e   :  { %v254_v5 = vmul.f32 %v1009_v48, %v248_v62 }
  0x9f   :  { %v280_v26 = vsel %vm65_vm4, %v274_v16, %v275_v20 }
  0xa0   :  { %v260_v12 = vadd.f32 %v1010_v54, %v254_v5  ;;  %v299_v30 = vsel %vm1203_vm1, %v280_v26, -3e+38 }
  0xa1   :  { %v237_v58 = vpop.f32.mrf.mxu2  ;;  %v1221_v33 = vmax.f32 %v271_v15, %v299_v30 }
  0xa2   :  { %v243_v60 = vadd.f32 %v237_v58, %v194_v55  ;;  %v268_v23 = vmul.f32 0.01, %v260_v12  ;;  %vm264_vm0 = vcmp.ge.f32.partialorder %v260_v12, 0.0 }
  0xa4   :  { %v249_v63 = vadd.f32 %v1008_v44, %v243_v60  ;;  %v272_v29 = vsel %vm264_vm0, %v260_v12, %v268_v23  ;;  %vm1510_vm0 = vcmask 130048   ;;  %v533_v12 = vld [vmem:[%s1506_s3] sm:$0x3f]  ;;  %v1298_v23 = vld [vmem:[%s1507_s1 + $0x10] sm:$0xff] }
  0xa5   :  { %v276_v31 = vrot.slane %v272_v29, 7 }
  0xa6   :  { %v255_v1 = vmul.f32 %v1009_v48, %v249_v63 }
  0xa7   :  { %v279_v34 = vsel %vm65_vm4, %v275_v20, %v276_v31  ;;  %v784_v20 = vmul.u32 12, %v1098_v4 }
  0xa8   :  { %v261_v6 = vadd.f32 %v1010_v54, %v255_v1 }
  0xa9   :  { %v786_v30 = vadd.s32 12, %v784_v20 }
  0xaa   :  { %vm265_vm10 = vcmp.ge.f32.partialorder %v261_v6, 0.0  ;;  %v269_v8 = vmul.f32 0.01, %v261_v6 }
  0xac   :  { %v273_v14 = vsel %vm265_vm10, %v261_v6, %v269_v8  ;;  %vm288_vm10 = vmand %vm1214_vm8, %vm284_vm9 }
  0xad   :  { %v277_v17 = vrot.slane %v273_v14, 7  ;;  %v300_v35 = vsel %vm288_vm10, %v279_v34, -3e+38  ;;  %vm1260_vm9 = vmor %vm1203_vm1, %vm30_vm5  ;;  %vm546_vm5 = vcmask 1045504   ;;  %v1309_v34 = vld [vmem:[%s1507_s1 + $0x8] sm:$0xff] }
  0xae   :  { %v1230_v37 = vmax.f32 %v272_v29, %v300_v35  ;;  %vm1268_vm10 = vmor %vm1234_vm6, %vm44_vm7  ;;  %982 = vmatpush.msk.msrb.mxu3 %vm546_vm5, %v533_v12  ;;  %v505_v29 = vrot.slane %v1298_v23, 7  ;;  %v504_v36 = vrot.slane %v1309_v34, 7 }
  0xaf   :  { %v281_v19 = vsel %vm65_vm4, %v277_v17, %v274_v16  ;;  %v278_v39 = vsel %vm65_vm4, %v276_v31, %v277_v17 }
  0xb0   :  { %v298_v21 = vsel %vm1512_vm14, %v281_v19, -3e+38  ;;  %v301_v40 = vsel %vm1234_vm6, %v278_v39, -3e+38  ;;  %v408_v19 = vand.u32 127, %v20_v0  ;;  %vm536_vm6 = vcmask 48128  }
  0xb1   :  { %v1201_v24 = vmax.f32 %v270_v10, %v298_v21  ;;  %v1242_v41 = vmax.f32 %v273_v14, %v301_v40  ;;  %v534_v10 = vld [vmem:[%s1506_s3 + $0x8] sm:$0x3f]  ;;  %v1293_v21 = vld [vmem:[%s1507_s1] sm:$0xff]  ;;  %v1055_v39 = vmov 0.0   ;;  %vm489_vm14 = vcmp.eq.s32.totalorder %v1119_v13, 12 }
  0xb2   :  { %978 = vmatpush.msk.msrb.mxu2 %vm546_vm5, %v534_v10  ;;  %v503_v27 = vrot.slane %v1293_v21, 7  ;;  %vm785_vm7 = vcmp.ge.s32.totalorder %v408_v19, %v784_v20  ;;  %v518_v10 = vrot.slane %v1293_v21, 1 }
  0xb3   :  { %967 = vmatmul.msk.f32.vlgmr.msra.gmra.mxu3 %vm1511_vm15, %v1201_v24  ;;  %979 = vmatmul.msk.f32.vlgmr.msrb.gmra.mxu2 %vm536_vm6, %v1293_v21  ;;  %v706_v21 = vld [vmem:[%s1506_s3 + $0x18] sm:$0xff] }
  0xb4   :  { %v508_v31 = vsel %vm65_vm4, %v505_v29, %v503_v27 }
  0xb5   :  { %v515_v35 = vsel %vm25_vm3, 0.0, %v508_v31 }
  0xbb   :  { %968 = vmatmul.msk.f32.gmra.mxu3 %vm1511_vm15, %v1221_v33  ;;  %980 = vmatmul.msk.f32.gmra.mxu2 %vm536_vm6, %v1309_v34 }
  0xc3   :  { %969 = vmatmul.msk.f32.gmra.mxu3 %vm1511_vm15, %v1230_v37  ;;  %981 = vmatmul.msk.f32.gmra.mxu2 %vm536_vm6, %v1298_v23 }
  0xcb   :  { %970 = vmatmul.msk.f32.gmra.mxu3 %vm1511_vm15, %v1242_v41 }
  0xd3   :  { %983 = vmatmul.msk.f32.vlgmr.msrb.gmra.mxu3 %vm536_vm6, %v515_v35 }
 0x136   :  { %v343_v43 = vpop.f32.mrf.mxu3 }
 0x137   :  { %v344_v44 = vadd.f32 %v1011_v42, %v343_v43  ;;  %v507_v43 = vsel %vm65_vm4, %v503_v27, %v504_v36 }
 0x139   :  { %1022 = vtanh.f32 %v344_v44 }
 0x13e   :  { %v346_v46 = vpop.f32.mrf.mxu3 }
 0x13f   :  { %v1023_v47 = vpop.eup %1022  ;;  %v347_v48 = vadd.f32 %v1011_v42, %v346_v46 }
 0x140   :  { %v361_v49 = vmul.f32 %v1023_v47, %v1012_v45 }
 0x141   :  { %1024 = vtanh.f32 %v347_v48 }
 0x142   :  { %v366_v50 = vsel %vm1510_vm0, %v361_v49, 0.0 }
 0x143   :  { %367 = vadd.xlane.f32.xlu0 %v366_v50 }
 0x146   :  { %v349_v51 = vpop.f32.mrf.mxu3 }
 0x147   :  { %v1025_v52 = vpop.eup %1024  ;;  %v350_v53 = vadd.f32 %v1011_v42, %v349_v51  ;;  %v409_v51 = vmul.u32 16, %v1098_v4 }
 0x148   :  { %v362_v54 = vmul.f32 %v1025_v52, %v1012_v45 }
 0x149   :  { %1026 = vtanh.f32 %v350_v53  ;;  %vm410_vm3 = vcmp.ge.s32.totalorder %v408_v19, %v409_v51 }
 0x14a   :  { %v369_v55 = vsel %vm1510_vm0, %v362_v54, 0.0 }
 0x14b   :  { %370 = vadd.xlane.f32.xlu0 %v369_v55 }
 0x14e   :  { %v352_v56 = vpop.f32.mrf.mxu3 }
 0x14f   :  { %v1027_v57 = vpop.eup %1026  ;;  %v353_v58 = vadd.f32 %v1011_v42, %v352_v56  ;;  %v411_v56 = vadd.s32 16, %v409_v51 }
 0x150   :  { %v363_v59 = vmul.f32 %v1027_v57, %v1012_v45  ;;  %v506_v57 = vsel %vm65_vm4, %v504_v36, %v505_v29  ;;  %v1014_v36 = vld [vmem:[%s1506_s3 + $0x21] ss:$0 sm:$0xff] }
 0x151   :  { %1028 = vtanh.f32 %v353_v58 }
 0x152   :  { %v372_v60 = vsel %vm1510_vm0, %v363_v59, 0.0 }
 0x153   :  { %373 = vadd.xlane.f32.xlu1 %v372_v60 }
 0x157   :  { %v1029_v61 = vpop.eup %1028 }
 0x158   :  { %v364_v62 = vmul.f32 %v1029_v61, %v1012_v45  ;;  %v516_v45 = vsel %vm489_vm14, 0.0, %v507_v43 }
 0x159   :  { %984 = vmatmul.msk.f32.gmra.mxu3 %vm536_vm6, %v516_v45  ;;  %v1015_v45 = vld [vmem:[%s1506_s3 + $0x22] ss:$0 sm:$0xff] }
 0x15a   :  { %v375_v63 = vsel %vm1510_vm0, %v364_v62, 0.0  ;;  %vm787_vm0 = vcmp.lt.s32.totalorder %v408_v19, %v786_v30 }
 0x15b   :  { %376 = vadd.xlane.f32.xlu1 %v375_v63  ;;  %vm788_vm15 = vmand %vm785_vm7, %vm787_vm0 }
 0x15c   :  { %v1315_v40 = vsel %vm788_vm15, 1.0, %v1055_v39  ;;  %vm412_vm15 = vcmp.lt.s32.totalorder %v408_v19, %v411_v56  ;;  %v605_v19 = vpop.f32.mrf.mxu3 }
 0x15d   :  { %vm413_vm0 = vmand %vm410_vm3, %vm412_vm15 }
 0x15e   :  { %vm686_vm3 = vmxor %vm489_vm14, %vm1054_vm12 }
 0x15f   :  { %vm1527_vm15 = vmand %vm1178_vm11, %vm1185_vm13 }
 0x161   :  { %985 = vmatmul.msk.f32.gmra.mxu3 %vm536_vm6, %v506_v57 }
 0x1b6   :  { %v368_v1 = vpop.xlane.xlu0 %367 }
 0x1b7   :  { %v378_v28 = vsel %vm1178_vm11, %v368_v1, -3e+38 }
 0x1be   :  { %v371_v5 = vpop.xlane.xlu0 %370 }
 0x1bf   :  { %v379_v7 = vsel %vm1260_vm9, %v371_v5, -3e+38 }
 0x1c0   :  { %v382_v16 = vmax.f32 %v378_v28, %v379_v7  ;;  %v1056_v7 = vmov 0   ;;  %v520_v28 = vrot.slane %v1298_v23, 1 }
 0x1c1   :  { %1005 = vset.pattern.permute.xlu1 %v1056_v7  ;;  %1006 = vset.pattern.permute.xlu2 %v1056_v7 }
 0x1c2   :  { %1007 = vset.pattern.permute.xlu0 %v1056_v7 }
 0x1c6   :  { %v374_v2 = vpop.xlane.xlu1 %373 }
 0x1c7   :  { %v380_v14 = vsel %vm1214_vm8, %v374_v2, -3e+38 }
 0x1ce   :  { %v377_v8 = vpop.xlane.xlu1 %376 }
 0x1cf   :  { %v381_v15 = vsel %vm1268_vm10, %v377_v8, -3e+38 }
 0x1d0   :  { %v383_v17 = vmax.f32 %v380_v14, %v381_v15  ;;  %v523_v15 = vsel %vm86_vm2, %v520_v28, %v518_v10 }
 0x1d2   :  { %v384_v18 = vmax.f32 %v382_v16, %v383_v17 }
 0x1d4   :  { %v385_v26 = vrot.slane %v384_v18, 4 }
 0x1d6   :  { %v386_v0 = vmax.f32 %v384_v18, %v385_v26  ;;  %v567_v18 = vpop.f32.mrf.mxu2 }
 0x1d7   :  { %v606_v29 = vadd.f32 %v605_v19, %v567_v18 }
 0x1d8   :  { %v387_v38 = vrot.slane %v386_v0, 2 }
 0x1da   :  { %v388_v42 = vmax.f32 %v386_v0, %v387_v38  ;;  %v1013_v0 = vld [vmem:[%s1506_s3 + $0x20] ss:$0 sm:$0xff] }
 0x1dc   :  { %v389_v44 = vrot.slane %v388_v42, 1  ;;  %v608_v27 = vpop.f32.mrf.mxu3 }
 0x1de   :  { %v390_v46 = vmax.f32 %v388_v42, %v389_v44  ;;  %v570_v23 = vpop.f32.mrf.mxu2 }
 0x1df   :  { %v609_v31 = vadd.f32 %v608_v27, %v570_v23  ;;  %v1017_v27 = vld [vmem:[%s1506_s3 + $0x24] ss:$0 sm:$0xff] }
 0x1e0   :  { %v394_v47 = vsub.f32 %v377_v8, %v390_v46  ;;  %v393_v48 = vsub.f32 %v374_v2, %v390_v46  ;;  %v392_v49 = vsub.f32 %v371_v5, %v390_v46  ;;  %v391_v50 = vsub.f32 %v368_v1, %v390_v46 }
 0x1e2   :  { %v401_v52 = vmul.f32 1.442695, %v394_v47  ;;  %v399_v53 = vmul.f32 1.442695, %v393_v48  ;;  %v397_v54 = vmul.f32 1.442695, %v392_v49 }
 0x1e3   :  { %v395_v55 = vmul.f32 1.442695, %v391_v50 }
 0x1e4   :  { %1030 = vpow2.f32 %v401_v52  ;;  %v611_v42 = vpop.f32.mrf.mxu3 }
 0x1e5   :  { %1032 = vpow2.f32 %v399_v53 }
 0x1e6   :  { %1034 = vpow2.f32 %v397_v54 }
 0x1e7   :  { %1036 = vpow2.f32 %v395_v55 }
 0x1ea   :  { %v1031_v58 = vpop.eup %1030 }
 0x1eb   :  { %v1033_v59 = vpop.eup %1032  ;;  %973 = vmatpush.msk.msrb.mxu1 %vm1268_vm10, %v1031_v58  ;;  %v406_v60 = vsel %vm1268_vm10, %v1031_v58, 0.0  ;;  %vm420_vm10 = vcmask 261120  }
 0x1ec   :  { %v1035_v61 = vpop.eup %1034  ;;  %v419_v62 = vmul.f32 %v406_v60, %v1242_v41  ;;  %v405_v63 = vsel %vm1214_vm8, %v1033_v59, 0.0  ;;  %v971_v41 = vsel %vm413_vm0, 1.0, %v1055_v39  ;;  %v573_v39 = vpop.f32.mrf.mxu2  ;;  %vm689_vm0 = vmand %vm1203_vm1, %vm686_vm3 }
 0x1ed   :  { %v1037_v1 = vpop.eup %1036  ;;  %974 = vmatpush.msk.msrb.mxu1 %vm1214_vm8, %v1033_v59  ;;  %v404_v2 = vsel %vm1260_vm9, %v1035_v61, 0.0  ;;  %v418_v5 = vmul.f32 %v405_v63, %v1230_v37  ;;  %v612_v46 = vadd.f32 %v611_v42, %v573_v39 }
 0x1ee   :  { %436 = vmatpush.msrb.mxu0 %v419_v62  ;;  %v403_v6 = vsel %vm1178_vm11, %v1037_v1, 0.0  ;;  %v417_v8 = vmul.f32 %v404_v2, %v1221_v33  ;;  %v519_v33 = vrot.slane %v1309_v34, 1 }
 0x1ef   :  { %975 = vmatpush.msk.msrb.mxu1 %vm1260_vm9, %v1035_v61  ;;  %v416_v37 = vmul.f32 %v403_v6, %v1201_v24  ;;  %vm486_vm9 = vcmp.eq.s32.totalorder %v1119_v13, 11 }
 0x1f0   :  { %437 = vmatpush.msrb.mxu0 %v418_v5  ;;  %v522_v12 = vsel %vm86_vm2, %v518_v10, %v519_v33  ;;  %v521_v24 = vsel %vm86_vm2, %v519_v33, %v520_v28 }
 0x1f1   :  { %976 = vmatpush.msk.msrb.mxu1 %vm1178_vm11, %v1037_v1  ;;  %v531_v14 = vsel %vm486_vm9, 0.0, %v521_v24 }
 0x1f2   :  { %438 = vmatpush.msrb.mxu0 %v417_v8  ;;  %977 = vmatmul.msk.f32.vlgmr.msrb.gmra.mxu1 %vm420_vm10, %v971_v41 }
 0x1f3   :  { %733 = vmatpush.msra.mxu1 %v706_v21  ;;  %v1016_v21 = vld [vmem:[%s1506_s3 + $0x23] ss:$0 sm:$0xff] }
 0x1f4   :  { %439 = vmatpush.msrb.mxu0 %v416_v37 }
 0x1f5   :  { %972 = vmatmul.msk.f32.vlgmr.msrb.gmra.mxu0 %vm420_vm10, %v971_v41 }
 0x1f6   :  { %986 = vmatpush.msk.msra.mxu0 %vm546_vm5, %v535_v3  ;;  %vm496_vm5 = vcmp.eq.s32.totalorder %v1138_v22, 23  ;;  %v484_v3 = vld [vmem:[%s1508_s4] sm:$0xff] }
 0x1f7   :  { %v532_v16 = vsel %vm496_vm5, 0.0, %v523_v15  ;;  %900 = vmatpush.msrb.mxu1 %v484_v3 }
 0x1fd   :  { %987 = vmatmul.msk.f32.vlgmr.msra.gmra.mxu0 %vm536_vm6, %v522_v12 }
 0x205   :  { %988 = vmatmul.msk.f32.gmra.mxu0 %vm536_vm6, %v531_v14 }
 0x20d   :  { %989 = vmatmul.msk.f32.gmra.mxu0 %vm536_vm6, %v532_v16 }
 0x26f   :  { %v461_v17 = vpop.f32.mrf.mxu1 }
 0x270   :  { %466 = vperm.xlu1 %1005, %v461_v17  }
 0x272   :  { %v1375_v20 = vpop.f32.mrf.mxu0 }
 0x27a   :  { %v643_v26 = vpop.f32.mrf.mxu0 }
 0x27b   :  { %v652_v30 = vadd.f32 %v643_v26, %v606_v29 }
 0x27d   :  { %v657_v35 = vadd.f32 %v1013_v0, %v652_v30 }
 0x27f   :  { %v662_v44 = vmul.f32 %v1014_v36, %v657_v35 }
 0x281   :  { %v667_v49 = vadd.f32 %v1015_v45, %v662_v44 }
 0x282   :  { %v646_v34 = vpop.f32.mrf.mxu0 }
 0x283   :  { %v653_v38 = vadd.f32 %v646_v34, %v609_v31  ;;  %v673_v53 = vmul.f32 0.01, %v667_v49  ;;  %vm670_vm2 = vcmp.ge.f32.partialorder %v667_v49, 0.0 }
 0x285   :  { %v658_v43 = vadd.f32 %v1013_v0, %v653_v38  ;;  %v676_v57 = vsel %vm670_vm2, %v667_v49, %v673_v53  ;;  %vm1528_vm2 = vcmask 64512  }
 0x286   :  { %v679_v61 = vrot.slane %v676_v57, 7  ;;  %vm1529_vm12 = vmmov %vm1528_vm2 }
 0x287   :  { %v663_v47 = vmul.f32 %v1014_v36, %v658_v43  ;;  %vm1530_vm13 = vmmov %vm1528_vm2 }
 0x288   :  { %vm1531_vm3 = vmmov %vm1528_vm2 }
 0x289   :  { %v668_v51 = vadd.f32 %v1015_v45, %v663_v47 }
 0x28a   :  { %v649_v48 = vpop.f32.mrf.mxu0 }
 0x28b   :  { %v654_v50 = vadd.f32 %v649_v48, %v612_v46  ;;  %v674_v56 = vmul.f32 0.01, %v668_v51  ;;  %vm671_vm7 = vcmp.ge.f32.partialorder %v668_v51, 0.0 }
 0x28d   :  { %v659_v52 = vadd.f32 %v1013_v0, %v654_v50  ;;  %v677_v60 = vsel %vm671_vm7, %v668_v51, %v674_v56 }
 0x28e   :  { %v680_v1 = vrot.slane %v677_v60, 7 }
 0x28f   :  { %v664_v54 = vmul.f32 %v1014_v36, %v659_v52 }
 0x290   :  { %v683_v7 = vsel %vm65_vm4, %v679_v61, %v680_v1 }
 0x291   :  { %v669_v55 = vadd.f32 %v1015_v45, %v664_v54  ;;  %v698_v41 = vsel %vm689_vm0, %v683_v7, -3e+38 }
 0x292   :  { %v1407_v6 = vmax.f32 %v677_v60, %v698_v41 }
 0x293   :  { %vm672_vm6 = vcmp.ge.f32.partialorder %v669_v55, 0.0  ;;  %v675_v58 = vmul.f32 0.01, %v669_v55 }
 0x295   :  { %v678_v59 = vsel %vm672_vm6, %v669_v55, %v675_v58 }
 0x296   :  { %v681_v62 = vrot.slane %v678_v59, 7 }
 0x298   :  { %v684_v63 = vsel %vm65_vm4, %v681_v62, %v679_v61  ;;  %v682_v11 = vsel %vm65_vm4, %v680_v1, %v681_v62 }
 0x299   :  { %v697_v2 = vsel %vm1527_vm15, %v684_v63, -3e+38  ;;  %v699_v8 = vsel %vm1214_vm8, %v682_v11, -3e+38  ;;  %vm1532_vm15 = vcmask 130048  }
 0x29a   :  { %v1399_v5 = vmax.f32 %v676_v57, %v697_v2  ;;  %v1415_v37 = vmax.f32 %v678_v59, %v699_v8  ;;  %vm1533_vm0 = vmmov %vm1532_vm15 }
 0x29c   :  { %990 = vmatmul.msk.f32.vlgmr.msra.gmra.mxu1 %vm1528_vm2, %v1399_v5  ;;  %vm1534_vm2 = vmmov %vm1533_vm0 }
 0x2a4   :  { %991 = vmatmul.msk.f32.gmra.mxu1 %vm1529_vm12, %v1407_v6  ;;  %vm1437_vm12 = vmor %vm1203_vm1, %vm486_vm9  ;;  %vm794_vm1 = vcmask 195584  }
 0x2ac   :  { %992 = vmatmul.msk.f32.gmra.mxu1 %vm1530_vm13, %v1415_v37  ;;  %vm1447_vm13 = vmor %vm1214_vm8, %vm496_vm5 }
 0x2e2   :  { %v467_v10 = vpop.permute.xlu1 %466 }
 0x2e3   :  { %1038 = vrcp.f32 %v467_v10  ;;  %v480_v28 = vand.u32 2147483648, %v467_v10  ;;  %vm474_vm4 = vweird.f32 %v467_v10  ;;  %v478_v24 = vand.u32 2147483647, %v467_v10 }
 0x2e5   :  { %v481_v15 = vor.u32 1.1754944e-38, %v480_v28  ;;  %vm479_vm6 = vcmp.eq.f32.partialorder %v478_v24, 8.507059e+37 }
 0x2e9   :  { %v1039_v33 = vpop.eup %1038 }
 0x2ea   :  { %v470_v12 = vmul.f32 %v1039_v33, %v467_v10  ;;  %vm475_vm14 = vweird.f32 %v1039_v33 }
 0x2eb   :  { %vm476_vm7 = vmor %vm474_vm4, %vm475_vm14 }
 0x2ec   :  { %v471_v4 = vsub.f32 1.0, %v470_v12  ;;  %vm1539_vm4 = vmmov %vm1531_vm3 }
 0x2ee   :  { %v472_v14 = vmul.f32 %v1039_v33, %v471_v4 }
 0x2f0   :  { %v473_v16 = vadd.f32 %v1039_v33, %v472_v14 }
 0x2f2   :  { %v477_v17 = vsel %vm476_vm7, %v1039_v33, %v473_v16  ;;  %v858_v33 = vld [vmem:[%s1508_s4 + $0x8] sm:$0xff]  ;;  %vm946_vm7 = vcmask 1024  }
 0x2f3   :  { %v482_v18 = vsel %vm479_vm6, %v481_v15, %v477_v17  ;;  %877 = vmatpush.msrb.mxu0 %v858_v33 }
 0x2f4   :  { %v483_v19 = vmul.f32 %v482_v18, %v1375_v20 }
 0x2f6   :  { %1000 = vmatmul.msk.f32.vlgmr.msrb.gmra.mxu1 %vm1531_vm3, %v483_v19  ;;  %v920_v19 = vld [vmem:[%s1508_s4 + $0x28] sm:$0xff] }
 0x319   :  { %v735_v23 = vpop.f32.mrf.mxu1 }
 0x31a   :  { %v736_v26 = vadd.f32 %v1016_v21, %v735_v23  ;;  %v918_v23 = vld [vmem:[%s1508_s4 + $0x18] sm:$0xff] }
 0x31c   :  { %1040 = vtanh.f32 %v736_v26  ;;  %v917_v26 = vld [vmem:[%s1508_s4 + $0x10] sm:$0xff] }
 0x321   :  { %v738_v29 = vpop.f32.mrf.mxu1 }
 0x322   :  { %v1041_v30 = vpop.eup %1040  ;;  %v739_v0 = vadd.f32 %v1016_v21, %v738_v29 }
 0x323   :  { %v749_v31 = vmul.f32 %v1041_v30, %v1017_v27 }
 0x324   :  { %1042 = vtanh.f32 %v739_v0 }
 0x325   :  { %v752_v20 = vsel %vm1532_vm15, %v749_v31, 0.0 }
 0x326   :  { %753 = vadd.xlane.f32.xlu2 %v752_v20  ;;  %v1019_v20 = vld [vmem:[%s1508_s4 + $0x31] ss:$0 sm:$0xff] }
 0x329   :  { %v741_v34 = vpop.f32.mrf.mxu1 }
 0x32a   :  { %v1043_v35 = vpop.eup %1042  ;;  %v742_v36 = vadd.f32 %v1016_v21, %v741_v34  ;;  %v919_v21 = vld [vmem:[%s1508_s4 + $0x20] sm:$0xff] }
 0x32b   :  { %v750_v38 = vmul.f32 %v1043_v35, %v1017_v27  ;;  %v1020_v35 = vld [vmem:[%s1508_s4 + $0x32] ss:$0 sm:$0xff] }
 0x32c   :  { %1044 = vtanh.f32 %v742_v36 }
 0x32d   :  { %v755_v39 = vsel %vm1533_vm0, %v750_v38, 0.0 }
 0x32e   :  { %756 = vadd.xlane.f32.xlu2 %v755_v39 }
 0x332   :  { %v1045_v42 = vpop.eup %1044 }
 0x333   :  { %v751_v43 = vmul.f32 %v1045_v42, %v1017_v27  ;;  %v1018_v27 = vld [vmem:[%s1508_s4 + $0x30] ss:$0 sm:$0xff]  ;;  %v1021_v42 = vld [vmem:[%s1508_s4 + $0x33] ss:$0 sm:$0xff] }
 0x335   :  { %v758_v44 = vsel %vm1534_vm2, %v751_v43, 0.0 }
 0x336   :  { %759 = vadd.xlane.f32.xlu0 %v758_v44 }
 0x373   :  { %v902_v29 = vpop.f32.mrf.mxu1 }
 0x399   :  { %v754_v45 = vpop.xlane.xlu2 %753 }
 0x39a   :  { %v761_v13 = vsel %vm1178_vm11, %v754_v45, -3e+38 }
 0x3a1   :  { %v757_v47 = vpop.xlane.xlu2 %756 }
 0x3a2   :  { %v762_v48 = vsel %vm1437_vm12, %v757_v47, -3e+38 }
 0x3a3   :  { %v764_v25 = vmax.f32 %v761_v13, %v762_v48 }
 0x3a9   :  { %v760_v50 = vpop.xlane.xlu0 %759 }
 0x3aa   :  { %v763_v51 = vsel %vm1447_vm13, %v760_v50, -3e+38 }
 0x3ab   :  { %v765_v52 = vmax.f32 %v764_v25, %v763_v51 }
 0x3ad   :  { %v766_v53 = vrot.slane %v765_v52, 4 }
 0x3af   :  { %v767_v54 = vmax.f32 %v765_v52, %v766_v53 }
 0x3b1   :  { %v768_v55 = vrot.slane %v767_v54, 2 }
 0x3b3   :  { %v769_v56 = vmax.f32 %v767_v54, %v768_v55 }
 0x3b5   :  { %v770_v22 = vrot.slane %v769_v56, 1 }
 0x3b7   :  { %v771_v57 = vmax.f32 %v769_v56, %v770_v22 }
 0x3b9   :  { %v772_v32 = vsub.f32 %v754_v45, %v771_v57  ;;  %v773_v58 = vsub.f32 %v757_v47, %v771_v57  ;;  %v774_v59 = vsub.f32 %v760_v50, %v771_v57 }
 0x3bb   :  { %v775_v60 = vmul.f32 1.442695, %v772_v32  ;;  %v777_v61 = vmul.f32 1.442695, %v773_v58  ;;  %v779_v62 = vmul.f32 1.442695, %v774_v59 }
 0x3bd   :  { %1046 = vpow2.f32 %v775_v60 }
 0x3be   :  { %1048 = vpow2.f32 %v777_v61 }
 0x3bf   :  { %1050 = vpow2.f32 %v779_v62 }
 0x3c3   :  { %v1047_v63 = vpop.eup %1046 }
 0x3c4   :  { %v1049_v1 = vpop.eup %1048  ;;  %v781_v8 = vsel %vm1178_vm11, %v1047_v63, 0.0 }
 0x3c5   :  { %v1051_v2 = vpop.eup %1050  ;;  %v782_v41 = vsel %vm1437_vm12, %v1049_v1, 0.0  ;;  %v791_v10 = vmul.f32 %v781_v8, %v1399_v5 }
 0x3c6   :  { %v783_v7 = vsel %vm1447_vm13, %v1051_v2, 0.0  ;;  %995 = vmatpush.msk.msra.mxu3 %vm1447_vm13, %v1051_v2  ;;  %v792_v3 = vmul.f32 %v782_v41, %v1407_v6 }
 0x3c7   :  { %v793_v11 = vmul.f32 %v783_v7, %v1415_v37 }
 0x3c8   :  { %996 = vmatpush.msk.msra.mxu3 %vm1437_vm12, %v1049_v1 }
 0x3c9   :  { %811 = vmatpush.msra.mxu2 %v793_v11 }
 0x3ca   :  { %997 = vmatpush.msk.msra.mxu3 %vm1178_vm11, %v1047_v63 }
 0x3cb   :  { %812 = vmatpush.msra.mxu2 %v792_v3  ;;  %998 = vmatmul.msk.f32.vlgmr.msra.gmra.mxu3 %vm794_vm1, %v1315_v40 }
 0x3cd   :  { %813 = vmatpush.msra.mxu2 %v791_v10 }
 0x3ce   :  { %994 = vmatmul.msk.f32.vlgmr.msra.gmra.mxu2 %vm794_vm1, %v1315_v40 }
 0x3cf   :  { %938 = vmatpush.msrb.mxu2 %v920_v19 }
 0x3d1   :  { %939 = vmatpush.msrb.mxu2 %v919_v21 }
 0x3d3   :  { %940 = vmatpush.msrb.mxu2 %v918_v23 }
 0x3d5   :  { %941 = vmatpush.msrb.mxu2 %v917_v26 }
 0x44e   :  { %v835_v37 = vpop.f32.mrf.mxu3 }
 0x44f   :  { %840 = vperm.xlu2 %1006, %v835_v37  }
 0x451   :  { %v815_v15 = vpop.f32.mrf.mxu2 }
 0x4a9   :  { %v841_v12 = vpop.permute.xlu2 %840 }
 0x4aa   :  { %1052 = vrcp.f32 %v841_v12  ;;  %v854_v4 = vand.u32 2147483648, %v841_v12  ;;  %v852_v14 = vand.u32 2147483647, %v841_v12  ;;  %vm848_vm8 = vweird.f32 %v841_v12 }
 0x4ac   :  { %v855_v40 = vor.u32 1.1754944e-38, %v854_v4  ;;  %vm853_vm5 = vcmp.eq.f32.partialorder %v852_v14, 8.507059e+37 }
 0x4b0   :  { %v1053_v6 = vpop.eup %1052 }
 0x4b1   :  { %v844_v9 = vmul.f32 %v1053_v6, %v841_v12  ;;  %vm849_vm11 = vweird.f32 %v1053_v6 }
 0x4b2   :  { %vm850_vm9 = vmor %vm848_vm8, %vm849_vm11 }
 0x4b3   :  { %v845_v28 = vsub.f32 1.0, %v844_v9 }
 0x4b5   :  { %v846_v24 = vmul.f32 %v1053_v6, %v845_v28 }
 0x4b7   :  { %v847_v5 = vadd.f32 %v1053_v6, %v846_v24 }
 0x4b9   :  { %v851_v16 = vsel %vm850_vm9, %v1053_v6, %v847_v5 }
 0x4ba   :  { %v856_v17 = vsel %vm853_vm5, %v855_v40, %v851_v16 }
 0x4bb   :  { %v857_v18 = vmul.f32 %v856_v17, %v815_v15 }
 0x4bd   :  { %999 = vmatmul.msk.f32.vlgmr.msrb.gmra.mxu0 %vm1539_vm4, %v857_v18 }
 0x53a   :  { %v879_v30 = vpop.f32.mrf.mxu0 }
 0x53b   :  { %v903_v0 = vadd.f32 %v902_v29, %v879_v30 }
 0x53d   :  { %v907_v31 = vadd.f32 %v1018_v27, %v903_v0 }
 0x53f   :  { %vm908_vm14 = vcmp.ge.f32.partialorder %v907_v31, 0.0  ;;  %v909_v34 = vmul.f32 0.01, %v907_v31 }
 0x541   :  { %v910_v36 = vsel %vm908_vm14, %v907_v31, %v909_v34 }
 0x542   :  { %v913_v38 = vmul.f32 %v1019_v20, %v910_v36 }
 0x544   :  { %v916_v39 = vadd.f32 %v1020_v35, %v913_v38 }
 0x546   :  { %1001 = vmatmul.msk.f32.vlgmr.msrb.gmra.mxu2 %vm420_vm10, %v916_v39 }
 0x5c9   :  { %v943_v43 = vpop.f32.mrf.mxu2 }
 0x5ca   :  { %v944_v44 = vadd.f32 %v1021_v42, %v943_v43 }
 0x5cc   :  { %947 = vst.msk [vmem:[%s1509_s5] sm:$0x3] %vm946_vm7, %v944_v44 }

</bundles_post_ra>
